<compile_context>
chip_gen: v5e
topology: v5e:2x2
jax: 0.10.0
libtpu: 0.0.40
codegen_flags: <defaults>
</compile_context>

<pallas_src>
import functools

import jax
import jax.numpy as jnp
from jax import lax
from jax.experimental import pallas as pl
from jax.experimental.pallas import tpu as pltpu

_EPS = 1e-8          # matches torch cosine_similarity eps
_LANES = 128         # lane-dense padding target / output row width


def _round_up(n, m):
    return ((n + m - 1) // m) * m


def meat_loss_kernel(x_ref, w_ref, b_ref, out_ref, *, batch, h_pad, n_lang):
    B = batch
    Hp = h_pad

    x = x_ref[...].astype(jnp.float32)            # (2B, Hp) rows = [src ; tgt]

    # ---- one fused MXU call: [meaning | language | discriminator] heads ----
    y = jnp.dot(x, w_ref[...],
                preferred_element_type=jnp.float32) + b_ref[...]  # (2B, 2Hp+Lp)
    m = y[:, :Hp]                                  # (2B, Hp) meaning embeds
    l = y[:, Hp:2 * Hp]                            # (2B, Hp) language embeds
    logits = y[:, 2 * Hp:]                         # (2B, Lp) language logits

    src, tgt = x[:B], x[B:]
    src_m, tgt_m = m[:B], m[B:]
    src_l, tgt_l = l[:B], l[B:]

    # ---- batched cosine similarities (5 pairs -> one reduce pass) ----
    a = jnp.concatenate([src_m + src_l, tgt_m + tgt_l,
                         src_m + tgt_l, tgt_m + src_l, src_l], axis=0)   # (5B, Hp)
    b = jnp.concatenate([src, tgt, tgt, src, tgt_l], axis=0)             # (5B, Hp)

    dot = jnp.sum(a * b, axis=-1, keepdims=True)
    na2 = jnp.sum(a * a, axis=-1, keepdims=True)
    nb2 = jnp.sum(b * b, axis=-1, keepdims=True)
    # dot / max(sqrt(na2*nb2), eps)  ==  dot * rsqrt(max(na2*nb2, eps^2))
    cos = dot * lax.rsqrt(jnp.maximum(na2 * nb2, _EPS * _EPS))           # (5B, 1)

    inv_b = 1.0 / B
    one_minus = 1.0 - cos
    # CosineEmbeddingLoss, reduction='mean', margin=0:
    #   y=+1 -> mean(1 - cos);   y=-1 -> mean(max(cos, 0))
    rec = jnp.sum(one_minus[:2 * B]) * inv_b          # pairs 0,1
    xrec = jnp.sum(one_minus[2 * B:4 * B]) * inv_b    # pairs 2,3
    lang = jnp.sum(jnp.maximum(cos[4 * B:], 0.0)) * inv_b   # pair 4

    # ---- CrossEntropyLoss vs uniform soft target (y_adv = 1/n_languages) ----
    # per-row CE = lse(logits) - (1/L) * sum(logits);  pad lanes masked out.
    lane = lax.broadcasted_iota(jnp.int32, logits.shape, 1)
    valid = lane < n_lang
    ml = jnp.where(valid, logits, -jnp.inf)
    mx = jnp.max(ml, axis=-1, keepdims=True)
    lse = jnp.log(jnp.sum(jnp.exp(ml - mx), axis=-1, keepdims=True)) + mx
    row_mean = jnp.sum(jnp.where(valid, logits, 0.0),
                       axis=-1, keepdims=True) * (1.0 / n_lang)
    adv = jnp.sum(lse - row_mean) * inv_b             # = ce(src) + ce(tgt)

    total = rec + xrec + lang + adv

    # ---- single unmasked full-tile store: rows 0..4 = the 5 scalars ----
    row = lax.broadcasted_iota(jnp.int32, out_ref.shape, 0)
    out = jnp.where(row == 0, total,
          jnp.where(row == 1, rec,
          jnp.where(row == 2, xrec,
          jnp.where(row == 3, lang,
          jnp.where(row == 4, adv, 0.0)))))
    out_ref[...] = out.astype(jnp.float32)


def meat_base_loss(src_ids, tgt_ids, src_lang_label, tgt_lang_label, params):
    """Mirrors BaseLoss.forward. The lang labels are unused by the reference."""
    del src_lang_label, tgt_lang_label  # not used in the PyTorch forward pass

    B, H = src_ids.shape
    L = params["wd"].shape[1]
    Hp = _round_up(H, _LANES)
    Lp = _round_up(L, _LANES)

    def pad2(arr, r, c):
        arr = arr.astype(jnp.float32)
        return jnp.pad(arr, ((0, r - arr.shape[0]), (0, c - arr.shape[1])))

    # Fold the discriminator through the meaning head on the host so the
    # kernel needs a single MXU call:  m@wd + bd = x@(wm@wd) + (bm@wd + bd).
    wmd = params["wm"].astype(jnp.float32) @ params["wd"].astype(jnp.float32)
    bmd = (params["bm"].astype(jnp.float32) @ params["wd"].astype(jnp.float32)
           + params["bd"].astype(jnp.float32))

    # Stack src/tgt; concatenate the three heads (lane-dense, padded).
    x = jnp.concatenate([pad2(src_ids, B, Hp), pad2(tgt_ids, B, Hp)], axis=0)
    w = jnp.concatenate([pad2(params["wm"], Hp, Hp),
                         pad2(params["wl"], Hp, Hp),
                         pad2(wmd, Hp, Lp)], axis=1)          # (Hp, 2Hp+Lp)
    b = jnp.concatenate([pad2(params["bm"], 1, Hp),
                         pad2(params["bl"], 1, Hp),
                         pad2(bmd, 1, Lp)], axis=1)           # (1, 2Hp+Lp)

    kernel = functools.partial(meat_loss_kernel, batch=B, h_pad=Hp, n_lang=L)
    out = pl.pallas_call(
        kernel,
        out_shape=jax.ShapeDtypeStruct((8, _LANES), jnp.float32),
        in_specs=[pl.BlockSpec(memory_space=pltpu.MemorySpace.VMEM)] * 3,
        out_specs=pl.BlockSpec(memory_space=pltpu.MemorySpace.VMEM),
    )(x, w, b)

    vals = out[:5, 0]   # single host-side slice
    return vals[0], vals[1], vals[2], vals[3], vals[4], None


# ---------------- pure-JAX reference (for correctness check) ----------------
def _ref_forward(src, tgt, params):
    wm, bm, wl, bl, wd, bd = (params[k] for k in
                              ("wm", "bm", "wl", "bl", "wd", "bd"))
    src_m, src_l = src @ wm + bm, src @ wl + bl
    tgt_m, tgt_l = tgt @ wm + bm, tgt @ wl + bl
    src_lg, tgt_lg = src_m @ wd + bd, tgt_m @ wd + bd

    def cos(a, b):
        d = jnp.sum(a * b, -1)
        return d / jnp.maximum(jnp.linalg.norm(a, axis=-1)
                               * jnp.linalg.norm(b, axis=-1), _EPS)

    pos = lambda a, b: jnp.mean(1.0 - cos(a, b))
    neg = lambda a, b: jnp.mean(jnp.maximum(cos(a, b), 0.0))
    rec = pos(src_m + src_l, src) + pos(tgt_m + tgt_l, tgt)
    xrec = pos(src_m + tgt_l, tgt) + pos(tgt_m + src_l, src)
    lang = neg(src_l, tgt_l)
    L = wd.shape[1]

    def ce(lg):
        lp = jax.nn.log_softmax(lg, axis=-1)
        return jnp.mean(-jnp.sum(lp / L, axis=-1))

    adv = ce(src_lg) + ce(tgt_lg)
    return rec + xrec + lang + adv, rec, xrec, lang, adv


if __name__ == "__main__":
    B, H, N_LANG = 8, 32, 4
    key = jax.random.PRNGKey(0)
    k1, k2, k3, k4, k5 = jax.random.split(key, 5)

    src_ids = jax.random.normal(k1, (B, H), jnp.float32)
    tgt_ids = jax.random.normal(k2, (B, H), jnp.float32)
    src_lang_label = jnp.zeros((B,), jnp.int32)   # unused by forward
    tgt_lang_label = jnp.ones((B,), jnp.int32)    # unused by forward

    params = {
        "wm": 0.1 * jax.random.normal(k3, (H, H), jnp.float32),
        "bm": jnp.full((1, H), 0.01, jnp.float32),
        "wl": 0.1 * jax.random.normal(k4, (H, H), jnp.float32),
        "bl": jnp.full((1, H), -0.01, jnp.float32),
        "wd": 0.1 * jax.random.normal(k5, (H, N_LANG), jnp.float32),
        "bd": jnp.zeros((1, N_LANG), jnp.float32),
    }

    outs = meat_base_loss(src_ids, tgt_ids, src_lang_label, tgt_lang_label,
                          params)
    outs = jax.block_until_ready(outs)
    loss, rec, xrec, lang, adv, _ = outs

    ref = _ref_forward(src_ids, tgt_ids, params)
    got = jnp.stack([loss, rec, xrec, lang, adv])
    want = jnp.stack(list(ref))
    assert jnp.allclose(got, want, rtol=1e-4, atol=1e-4), (got, want)
    print("KERNEL_OK")
</pallas_src>

<mosaic_0001>
module attributes {stable_mosaic.version = 11 : i64} {
  func.func @meat_loss_kernel(%arg0: memref<16x128xf32, #tpu.memory_space<vmem>>, %arg1: memref<128x384xf32, #tpu.memory_space<vmem>>, %arg2: memref<1x384xf32, #tpu.memory_space<vmem>>, %arg3: memref<8x128xf32, #tpu.memory_space<vmem>>) attributes {dimension_semantics = [], scalar_prefetch = 0 : i64, scratch_operands = 0 : i64, tpu.core_type = #tpu.core_type<tc>} {
    %c0 = arith.constant 0 : index
    %c0_0 = arith.constant 0 : index
    %0 = vector.load %arg0[%c0, %c0_0] : memref<16x128xf32, #tpu.memory_space<vmem>>, vector<16x128xf32>
    %c0_1 = arith.constant 0 : index
    %c0_2 = arith.constant 0 : index
    %1 = vector.load %arg1[%c0_1, %c0_2] : memref<128x384xf32, #tpu.memory_space<vmem>>, vector<128x384xf32>
    %cst = arith.constant dense<0.000000e+00> : vector<16x384xf32>
    %2 = tpu.matmul %0, %1, %cst {dimension_numbers = #tpu.dot_dimension_numbers<[1], [0], [0], [1], [0, 0, 1, 1], [], []>} : vector<16x128xf32>, vector<128x384xf32>, vector<16x384xf32> -> vector<16x384xf32>
    %c0_3 = arith.constant 0 : index
    %c0_4 = arith.constant 0 : index
    %3 = vector.load %arg2[%c0_3, %c0_4] : memref<1x384xf32, #tpu.memory_space<vmem>>, vector<1x384xf32>
    %4 = vector.broadcast %3 : vector<1x384xf32> to vector<16x384xf32>
    %5 = arith.addf %2, %4 : vector<16x384xf32>
    %6 = vector.extract_strided_slice %5 {offsets = [0, 0], sizes = [16, 128], strides = [1, 1]} : vector<16x384xf32> to vector<16x128xf32>
    %7 = vector.extract_strided_slice %5 {offsets = [0, 128], sizes = [16, 128], strides = [1, 1]} : vector<16x384xf32> to vector<16x128xf32>
    %8 = vector.extract_strided_slice %5 {offsets = [0, 256], sizes = [16, 128], strides = [1, 1]} : vector<16x384xf32> to vector<16x128xf32>
    %9 = vector.extract_strided_slice %0 {offsets = [0, 0], sizes = [8, 128], strides = [1, 1]} : vector<16x128xf32> to vector<8x128xf32>
    %10 = vector.extract_strided_slice %0 {offsets = [8, 0], sizes = [8, 128], strides = [1, 1]} : vector<16x128xf32> to vector<8x128xf32>
    %11 = vector.extract_strided_slice %6 {offsets = [0, 0], sizes = [8, 128], strides = [1, 1]} : vector<16x128xf32> to vector<8x128xf32>
    %12 = vector.extract_strided_slice %6 {offsets = [8, 0], sizes = [8, 128], strides = [1, 1]} : vector<16x128xf32> to vector<8x128xf32>
    %13 = vector.extract_strided_slice %7 {offsets = [0, 0], sizes = [8, 128], strides = [1, 1]} : vector<16x128xf32> to vector<8x128xf32>
    %14 = vector.extract_strided_slice %7 {offsets = [8, 0], sizes = [8, 128], strides = [1, 1]} : vector<16x128xf32> to vector<8x128xf32>
    %15 = arith.addf %11, %13 : vector<8x128xf32>
    %16 = arith.addf %12, %14 : vector<8x128xf32>
    %17 = arith.addf %11, %14 : vector<8x128xf32>
    %18 = arith.addf %12, %13 : vector<8x128xf32>
    %19 = tpu.concatenate %15, %16, %17, %18, %13 in 0 : vector<8x128xf32>, vector<8x128xf32>, vector<8x128xf32>, vector<8x128xf32>, vector<8x128xf32> -> vector<40x128xf32>
    %20 = tpu.concatenate %9, %10, %10, %9, %14 in 0 : vector<8x128xf32>, vector<8x128xf32>, vector<8x128xf32>, vector<8x128xf32>, vector<8x128xf32> -> vector<40x128xf32>
    %21 = arith.mulf %19, %20 : vector<40x128xf32>
    %cst_5 = arith.constant dense<0.000000e+00> : vector<40xf32>
    %22 = vector.multi_reduction <add>, %21, %cst_5 [1] : vector<40x128xf32> to vector<40xf32>
    %23 = vector.shape_cast %22 : vector<40xf32> to vector<40x1xf32>
    %24 = arith.mulf %19, %19 : vector<40x128xf32>
    %cst_6 = arith.constant dense<0.000000e+00> : vector<40xf32>
    %25 = vector.multi_reduction <add>, %24, %cst_6 [1] : vector<40x128xf32> to vector<40xf32>
    %26 = vector.shape_cast %25 : vector<40xf32> to vector<40x1xf32>
    %27 = arith.mulf %20, %20 : vector<40x128xf32>
    %cst_7 = arith.constant dense<0.000000e+00> : vector<40xf32>
    %28 = vector.multi_reduction <add>, %27, %cst_7 [1] : vector<40x128xf32> to vector<40xf32>
    %29 = vector.shape_cast %28 : vector<40xf32> to vector<40x1xf32>
    %30 = arith.mulf %26, %29 : vector<40x1xf32>
    %cst_8 = arith.constant 1.000000e-16 : f32
    %31 = vector.broadcast %cst_8 : f32 to vector<40x1xf32>
    %32 = arith.maximumf %30, %31 : vector<40x1xf32>
    %33 = math.rsqrt %32 : vector<40x1xf32>
    %34 = arith.mulf %23, %33 : vector<40x1xf32>
    %cst_9 = arith.constant 1.000000e+00 : f32
    %35 = vector.broadcast %cst_9 : f32 to vector<40x1xf32>
    %36 = arith.subf %35, %34 : vector<40x1xf32>
    %37 = vector.extract_strided_slice %36 {offsets = [0, 0], sizes = [16, 1], strides = [1, 1]} : vector<40x1xf32> to vector<16x1xf32>
    %38 = vector.shape_cast %37 : vector<16x1xf32> to vector<1x16x1xf32>
    %cst_10 = arith.constant dense<0.000000e+00> : vector<1xf32>
    %39 = vector.multi_reduction <add>, %38, %cst_10 [1, 2] : vector<1x16x1xf32> to vector<1xf32>
    %40 = vector.shape_cast %39 : vector<1xf32> to vector<1x1x1xf32>
    %41 = vector.extract %40[0, 0, 0] : f32 from vector<1x1x1xf32>
    %cst_11 = arith.constant 1.250000e-01 : f32
    %42 = arith.mulf %41, %cst_11 : f32
    %43 = vector.extract_strided_slice %36 {offsets = [16, 0], sizes = [16, 1], strides = [1, 1]} : vector<40x1xf32> to vector<16x1xf32>
    %44 = vector.shape_cast %43 : vector<16x1xf32> to vector<1x16x1xf32>
    %cst_12 = arith.constant dense<0.000000e+00> : vector<1xf32>
    %45 = vector.multi_reduction <add>, %44, %cst_12 [1, 2] : vector<1x16x1xf32> to vector<1xf32>
    %46 = vector.shape_cast %45 : vector<1xf32> to vector<1x1x1xf32>
    %47 = vector.extract %46[0, 0, 0] : f32 from vector<1x1x1xf32>
    %cst_13 = arith.constant 1.250000e-01 : f32
    %48 = arith.mulf %47, %cst_13 : f32
    %49 = vector.extract_strided_slice %34 {offsets = [32, 0], sizes = [8, 1], strides = [1, 1]} : vector<40x1xf32> to vector<8x1xf32>
    %cst_14 = arith.constant 0.000000e+00 : f32
    %50 = vector.broadcast %cst_14 : f32 to vector<8x1xf32>
    %51 = arith.maximumf %49, %50 : vector<8x1xf32>
    %52 = vector.shape_cast %51 : vector<8x1xf32> to vector<1x8x1xf32>
    %cst_15 = arith.constant dense<0.000000e+00> : vector<1xf32>
    %53 = vector.multi_reduction <add>, %52, %cst_15 [1, 2] : vector<1x8x1xf32> to vector<1xf32>
    %54 = vector.shape_cast %53 : vector<1xf32> to vector<1x1x1xf32>
    %55 = vector.extract %54[0, 0, 0] : f32 from vector<1x1x1xf32>
    %cst_16 = arith.constant 1.250000e-01 : f32
    %56 = arith.mulf %55, %cst_16 : f32
    %57 = tpu.iota {dimensions = array<i32: 1>} : vector<16x128xi32>
    %c4_i32 = arith.constant 4 : i32
    %58 = vector.broadcast %c4_i32 : i32 to vector<16x128xi32>
    %59 = arith.cmpi slt, %57, %58 : vector<16x128xi32>
    %cst_17 = arith.constant 0xFF800000 : f32
    %60 = vector.broadcast %cst_17 : f32 to vector<16x128xf32>
    %61 = arith.select %59, %8, %60 : vector<16x128xi1>, vector<16x128xf32>
    %cst_18 = arith.constant dense<0xFF800000> : vector<16xf32>
    %62 = vector.multi_reduction <maximumf>, %61, %cst_18 [1] : vector<16x128xf32> to vector<16xf32>
    %63 = vector.shape_cast %62 : vector<16xf32> to vector<16x1xf32>
    %64 = vector.broadcast %63 : vector<16x1xf32> to vector<16x128xf32>
    %65 = arith.subf %61, %64 : vector<16x128xf32>
    %66 = math.exp %65 : vector<16x128xf32>
    %cst_19 = arith.constant dense<0.000000e+00> : vector<16xf32>
    %67 = vector.multi_reduction <add>, %66, %cst_19 [1] : vector<16x128xf32> to vector<16xf32>
    %68 = vector.shape_cast %67 : vector<16xf32> to vector<16x1xf32>
    %69 = math.log %68 : vector<16x1xf32>
    %70 = arith.addf %69, %63 : vector<16x1xf32>
    %cst_20 = arith.constant 0.000000e+00 : f32
    %71 = vector.broadcast %cst_20 : f32 to vector<16x128xf32>
    %72 = arith.select %59, %8, %71 : vector<16x128xi1>, vector<16x128xf32>
    %cst_21 = arith.constant dense<0.000000e+00> : vector<16xf32>
    %73 = vector.multi_reduction <add>, %72, %cst_21 [1] : vector<16x128xf32> to vector<16xf32>
    %74 = vector.shape_cast %73 : vector<16xf32> to vector<16x1xf32>
    %cst_22 = arith.constant 2.500000e-01 : f32
    %75 = vector.broadcast %cst_22 : f32 to vector<16x1xf32>
    %76 = arith.mulf %74, %75 : vector<16x1xf32>
    %77 = arith.subf %70, %76 : vector<16x1xf32>
    %78 = vector.shape_cast %77 : vector<16x1xf32> to vector<1x16x1xf32>
    %cst_23 = arith.constant dense<0.000000e+00> : vector<1xf32>
    %79 = vector.multi_reduction <add>, %78, %cst_23 [1, 2] : vector<1x16x1xf32> to vector<1xf32>
    %80 = vector.shape_cast %79 : vector<1xf32> to vector<1x1x1xf32>
    %81 = vector.extract %80[0, 0, 0] : f32 from vector<1x1x1xf32>
    %cst_24 = arith.constant 1.250000e-01 : f32
    %82 = arith.mulf %81, %cst_24 : f32
    %83 = arith.addf %42, %48 : f32
    %84 = arith.addf %83, %56 : f32
    %85 = arith.addf %84, %82 : f32
    %86 = tpu.iota {dimensions = array<i32: 0>} : vector<8x128xi32>
    %c0_i32 = arith.constant 0 : i32
    %87 = vector.broadcast %c0_i32 : i32 to vector<8x128xi32>
    %88 = arith.cmpi eq, %86, %87 : vector<8x128xi32>
    %c1_i32 = arith.constant 1 : i32
    %89 = vector.broadcast %c1_i32 : i32 to vector<8x128xi32>
    %90 = arith.cmpi eq, %86, %89 : vector<8x128xi32>
    %c2_i32 = arith.constant 2 : i32
    %91 = vector.broadcast %c2_i32 : i32 to vector<8x128xi32>
    %92 = arith.cmpi eq, %86, %91 : vector<8x128xi32>
    %c3_i32 = arith.constant 3 : i32
    %93 = vector.broadcast %c3_i32 : i32 to vector<8x128xi32>
    %94 = arith.cmpi eq, %86, %93 : vector<8x128xi32>
    %c4_i32_25 = arith.constant 4 : i32
    %95 = vector.broadcast %c4_i32_25 : i32 to vector<8x128xi32>
    %96 = arith.cmpi eq, %86, %95 : vector<8x128xi32>
    %cst_26 = arith.constant 0.000000e+00 : f32
    %97 = vector.broadcast %82 : f32 to vector<8x128xf32>
    %98 = vector.broadcast %cst_26 : f32 to vector<8x128xf32>
    %99 = arith.select %96, %97, %98 : vector<8x128xi1>, vector<8x128xf32>
    %100 = vector.broadcast %56 : f32 to vector<8x128xf32>
    %101 = arith.select %94, %100, %99 : vector<8x128xi1>, vector<8x128xf32>
    %102 = vector.broadcast %48 : f32 to vector<8x128xf32>
    %103 = arith.select %92, %102, %101 : vector<8x128xi1>, vector<8x128xf32>
    %104 = vector.broadcast %42 : f32 to vector<8x128xf32>
    %105 = arith.select %90, %104, %103 : vector<8x128xi1>, vector<8x128xf32>
    %106 = vector.broadcast %85 : f32 to vector<8x128xf32>
    %107 = arith.select %88, %106, %105 : vector<8x128xi1>, vector<8x128xf32>
    %c0_27 = arith.constant 0 : index
    %c0_28 = arith.constant 0 : index
    %108 = vector.load %arg3[%c0_27, %c0_28] : memref<8x128xf32, #tpu.memory_space<vmem>>, vector<8x128xf32>
    tpu.vector_store %arg3[%c0_27, %c0_28], %107 {strides = array<i32>} : memref<8x128xf32, #tpu.memory_space<vmem>>, vector<8x128xf32>,
    return
  }
}

</mosaic_0001>

<bundles_post_ra>
// kernel: tpu_custom_call.1
= control target key start
LH: loop header
LB: loop body
LE: loop exit
PB: predicated region body
PF: predicated region fallthrough
CT: control target
= control target key end

     0   :  { %8 = vsyncpa [#allocation3], 0  ;;  %s668_s0 = inlined_call_operand.hbm [shape: f32[16,128], index: 0, kind: input, shape index: {}]   ;;  %s669_s1 = inlined_call_operand.hbm [shape: f32[128,384], index: 1, kind: input, shape index: {}]   ;;  %s670_s2 = inlined_call_operand.hbm [shape: f32[1,384], index: 2, kind: input, shape index: {}]   ;;  %s671_s3 = inlined_call_operand.hbm [shape: f32[8,128], index: 3, kind: output, shape index: {}]  }
   0x1   :  { %9 = vsyncpa [#allocation6], 0  ;;  %s28_s14 = sshll.u32 %s669_s1, 4  ;;  %s29_s14 = int_to_ptr.hbm [resolvable:$true] %s28_s14 }
   0x2   :  { %10 = vsyncpa [#allocation4], 0  ;;  %s577_s15 = smov [#allocation5]   ;;  %s15_s19 = sshll.u32 %s668_s0, 4  ;;  %s16_s19 = int_to_ptr.hbm [resolvable:$true] %s15_s19 }
   0x3   :  { %s30_s16 = sshll.u32 %s577_s15, 4  ;;  %s578_s20 = smov 384   ;;  %s31_s16 = int_to_ptr.vmem [resolvable:$true] %s30_s16 }
   0x4   :  { %s579_s21 = smov 24   ;;  %s580_s22 = smov [#allocation2]  }
   0x5   :  { %36 = dma.hbm_to_vmem [thread:$0]  %s29_s14, 6144, %s31_s16, [#allocation6], %s578_s20, %s578_s20, %s579_s21  }
   0x6   :  { %s17_s23 = sshll.u32 %s580_s22, 4  ;;  %s581_s24 = smov 128   ;;  %s18_s23 = int_to_ptr.vmem [resolvable:$true] %s17_s23 }
   0x7   :  { %s582_s25 = smov 8   ;;  %s42_s27 = sshll.u32 %s670_s2, 4  ;;  %s43_s27 = int_to_ptr.hbm [resolvable:$true] %s42_s27 }
   0x8   :  { %23 = dma.hbm_to_vmem [thread:$0]  %s16_s19, 256, %s18_s23, [#allocation3], %s581_s24, %s581_s24, %s582_s25  }
   0x9   :  { %s583_s28 = smov [#allocation7]  }
   0xa   :  { %s44_s29 = sshll.u32 %s583_s28, 4  ;;  %s45_s29 = int_to_ptr.vmem [resolvable:$true] %s44_s29 }
   0xb   :  { %47 = dma.hbm_to_vmem [thread:$0]  %s43_s27, 48, %s45_s29, [#allocation6]  }
   0xc   :  { %571 = dma.done.wait [#allocation3], 256  }
   0xd   :  { %572 = vsyncadd [#allocation3], 4294967040 }
   0xe   :  { %573 = dma.done.wait [#allocation6], 6192  }
   0xf   :  { %574 = vsyncadd [#allocation6], 4294961104  ;;  %v109_v0 = vld [vmem:[#allocation5 + $0x178] sm:$0xff]  ;;  %v106_v1 = vld [vmem:[#allocation5 + $0x160] sm:$0xff]  ;;  %v338_v50 = vlaneseq  ;;  %vm299_vm10 = vcmask 7168   ;;  %s584_s12 = smov [#allocation8]  }
  0x10   :  { %164 = vmatpush.msra.mxu2 %v109_v0  ;;  %v103_v2 = vld [vmem:[#allocation5 + $0x148] sm:$0xff]  ;;  %v100_v3 = vld [vmem:[#allocation5 + $0x130] sm:$0xff]  ;;  %v97_v4 = vld [vmem:[#allocation5 + $0x118] sm:$0xff]  ;;  %s412_s13 = sshll.u32 %s584_s12, 4  ;;  %s414_s16 = sshll.u32 %s671_s3, 4  ;;  %s413_s13 = int_to_ptr.vmem [resolvable:$true] %s412_s13  ;;  %s415_s16 = int_to_ptr.hbm [resolvable:$true] %s414_s16 }
  0x11   :  { %v94_v5 = vld [vmem:[#allocation5 + $0x100] sm:$0xff]  ;;  %v108_v6 = vld [vmem:[#allocation5 + $0x170] sm:$0xff]  ;;  %v105_v7 = vld [vmem:[#allocation5 + $0x158] sm:$0xff]  ;;  %v339_v52 = vand.u32 127, %v338_v50 }
  0x12   :  { %165 = vmatpush.msra.mxu2 %v106_v1  ;;  %141 = vmatpush.msra.mxu1 %v108_v6  ;;  %v107_v8 = vld [vmem:[#allocation5 + $0x168] sm:$0xff]  ;;  %v102_v10 = vld [vmem:[#allocation5 + $0x140] sm:$0xff]  ;;  %v104_v11 = vld [vmem:[#allocation5 + $0x150] sm:$0xff] }
  0x13   :  { %v91_v9 = vld [vmem:[#allocation5 + $0xe8] sm:$0xff]  ;;  %118 = vmatpush.msra.mxu0 %v107_v8  ;;  %425 = vmatpush.msra.mxu3 %v107_v8  ;;  %v101_v12 = vld [vmem:[#allocation5 + $0x138] sm:$0xff]  ;;  %v88_v13 = vld [vmem:[#allocation5 + $0xd0] sm:$0xff]  ;;  %vm340_vm0 = vcmp.lt.s32.totalorder %v339_v52, 4 }
  0x14   :  { %166 = vmatpush.msra.mxu2 %v103_v2  ;;  %142 = vmatpush.msra.mxu1 %v105_v7  ;;  %v99_v14 = vld [vmem:[#allocation5 + $0x128] sm:$0xff]  ;;  %v98_v15 = vld [vmem:[#allocation5 + $0x120] sm:$0xff]  ;;  %v85_v16 = vld [vmem:[#allocation5 + $0xb8] sm:$0xff] }
  0x15   :  { %119 = vmatpush.msra.mxu0 %v104_v11  ;;  %426 = vmatpush.msra.mxu3 %v104_v11  ;;  %v96_v17 = vld [vmem:[#allocation5 + $0x110] sm:$0xff]  ;;  %v95_v18 = vld [vmem:[#allocation5 + $0x108] sm:$0xff]  ;;  %v82_v19 = vld [vmem:[#allocation5 + $0xa0] sm:$0xff] }
  0x16   :  { %167 = vmatpush.msra.mxu2 %v100_v3  ;;  %143 = vmatpush.msra.mxu1 %v102_v10  ;;  %v93_v20 = vld [vmem:[#allocation5 + $0xf8] sm:$0xff]  ;;  %v92_v21 = vld [vmem:[#allocation5 + $0xf0] sm:$0xff]  ;;  %v79_v22 = vld [vmem:[#allocation5 + $0x88] sm:$0xff] }
  0x17   :  { %120 = vmatpush.msra.mxu0 %v101_v12  ;;  %427 = vmatpush.msra.mxu3 %v101_v12  ;;  %v90_v23 = vld [vmem:[#allocation5 + $0xe0] sm:$0xff]  ;;  %v89_v24 = vld [vmem:[#allocation5 + $0xd8] sm:$0xff]  ;;  %v76_v25 = vld [vmem:[#allocation5 + $0x70] sm:$0xff] }
  0x18   :  { %168 = vmatpush.msra.mxu2 %v97_v4  ;;  %144 = vmatpush.msra.mxu1 %v99_v14  ;;  %v87_v26 = vld [vmem:[#allocation5 + $0xc8] sm:$0xff]  ;;  %v86_v27 = vld [vmem:[#allocation5 + $0xc0] sm:$0xff]  ;;  %v73_v28 = vld [vmem:[#allocation5 + $0x58] sm:$0xff] }
  0x19   :  { %121 = vmatpush.msra.mxu0 %v98_v15  ;;  %428 = vmatpush.msra.mxu3 %v98_v15  ;;  %v84_v29 = vld [vmem:[#allocation5 + $0xb0] sm:$0xff]  ;;  %v83_v30 = vld [vmem:[#allocation5 + $0xa8] sm:$0xff]  ;;  %v70_v31 = vld [vmem:[#allocation5 + $0x40] sm:$0xff] }
  0x1a   :  { %169 = vmatpush.msra.mxu2 %v94_v5  ;;  %145 = vmatpush.msra.mxu1 %v96_v17  ;;  %v81_v32 = vld [vmem:[#allocation5 + $0x98] sm:$0xff]  ;;  %v80_v33 = vld [vmem:[#allocation5 + $0x90] sm:$0xff]  ;;  %v67_v34 = vld [vmem:[#allocation5 + $0x28] sm:$0xff] }
  0x1b   :  { %122 = vmatpush.msra.mxu0 %v95_v18  ;;  %429 = vmatpush.msra.mxu3 %v95_v18  ;;  %v78_v35 = vld [vmem:[#allocation5 + $0x80] sm:$0xff]  ;;  %v77_v36 = vld [vmem:[#allocation5 + $0x78] sm:$0xff]  ;;  %v64_v37 = vld [vmem:[#allocation5 + $0x10] sm:$0xff] }
  0x1c   :  { %170 = vmatpush.msra.mxu2 %v91_v9  ;;  %146 = vmatpush.msra.mxu1 %v93_v20  ;;  %v75_v38 = vld [vmem:[#allocation5 + $0x68] sm:$0xff]  ;;  %v614_v39 = vld [vmem:[#allocation2] sm:$0xff]  ;;  %v74_v40 = vld [vmem:[#allocation5 + $0x60] sm:$0xff] }
  0x1d   :  { %123 = vmatpush.msra.mxu0 %v92_v21  ;;  %430 = vmatpush.msra.mxu3 %v92_v21  ;;  %v72_v41 = vld [vmem:[#allocation5 + $0x50] sm:$0xff]  ;;  %v71_v42 = vld [vmem:[#allocation5 + $0x48] sm:$0xff]  ;;  %v69_v43 = vld [vmem:[#allocation5 + $0x38] sm:$0xff]  ;;  %v221_v14 = vmul.f32 %v614_v39, %v614_v39 }
  0x1e   :  { %171 = vmatpush.msra.mxu2 %v88_v13  ;;  %147 = vmatpush.msra.mxu1 %v90_v23  ;;  %v68_v44 = vld [vmem:[#allocation5 + $0x30] sm:$0xff]  ;;  %v66_v45 = vld [vmem:[#allocation5 + $0x20] sm:$0xff]  ;;  %v65_v46 = vld [vmem:[#allocation5 + $0x18] sm:$0xff] }
  0x1f   :  { %124 = vmatpush.msra.mxu0 %v89_v24  ;;  %431 = vmatpush.msra.mxu3 %v89_v24  ;;  %v63_v47 = vld [vmem:[#allocation5 + $0x8] sm:$0xff]  ;;  %v617_v48 = vld [vmem:[#allocation2 + $0x8] sm:$0xff]  ;;  %v62_v49 = vld [vmem:[#allocation5] sm:$0xff] }
  0x20   :  { %172 = vmatpush.msra.mxu2 %v85_v16  ;;  %148 = vmatpush.msra.mxu1 %v87_v26  ;;  %v110_v51 = vld [vmem:[#allocation7] sm:$0x7]  ;;  %v222_v17 = vmul.f32 %v617_v48, %v617_v48 }
  0x21   :  { %125 = vmatpush.msra.mxu0 %v86_v27  ;;  %432 = vmatpush.msra.mxu3 %v86_v27  ;;  %v114_v53 = vperm.slane %v110_v51, 2  ;;  %v112_v56 = vperm.slane %v110_v51, 0  ;;  %v113_v59 = vperm.slane %v110_v51, 1 }
  0x22   :  { %173 = vmatpush.msra.mxu2 %v82_v19  ;;  %149 = vmatpush.msra.mxu1 %v84_v29 }
  0x23   :  { %126 = vmatpush.msra.mxu0 %v83_v30  ;;  %433 = vmatpush.msra.mxu3 %v83_v30 }
  0x24   :  { %174 = vmatpush.msra.mxu2 %v79_v22  ;;  %150 = vmatpush.msra.mxu1 %v81_v32 }
  0x25   :  { %127 = vmatpush.msra.mxu0 %v80_v33  ;;  %434 = vmatpush.msra.mxu3 %v80_v33 }
  0x26   :  { %175 = vmatpush.msra.mxu2 %v76_v25  ;;  %151 = vmatpush.msra.mxu1 %v78_v35 }
  0x27   :  { %128 = vmatpush.msra.mxu0 %v77_v36  ;;  %435 = vmatpush.msra.mxu3 %v77_v36 }
  0x28   :  { %176 = vmatpush.msra.mxu2 %v73_v28  ;;  %152 = vmatpush.msra.mxu1 %v75_v38 }
  0x29   :  { %129 = vmatpush.msra.mxu0 %v74_v40  ;;  %436 = vmatpush.msra.mxu3 %v74_v40 }
  0x2a   :  { %177 = vmatpush.msra.mxu2 %v70_v31  ;;  %153 = vmatpush.msra.mxu1 %v72_v41 }
  0x2b   :  { %130 = vmatpush.msra.mxu0 %v71_v42  ;;  %437 = vmatpush.msra.mxu3 %v71_v42 }
  0x2c   :  { %178 = vmatpush.msra.mxu2 %v67_v34  ;;  %154 = vmatpush.msra.mxu1 %v69_v43 }
  0x2d   :  { %131 = vmatpush.msra.mxu0 %v68_v44  ;;  %438 = vmatpush.msra.mxu3 %v68_v44 }
  0x2e   :  { %179 = vmatpush.msra.mxu2 %v64_v37  ;;  %155 = vmatpush.msra.mxu1 %v66_v45 }
  0x2f   :  { %180 = vmatmul.f32.vlgmr.msra.gmra.mxu2 %v614_v39  ;;  %132 = vmatpush.msra.mxu0 %v65_v46 }
  0x30   :  { %156 = vmatpush.msra.mxu1 %v63_v47  ;;  %439 = vmatpush.msra.mxu3 %v65_v46 }
  0x31   :  { %157 = vmatmul.f32.vlgmr.msra.gmra.mxu1 %v614_v39  ;;  %133 = vmatpush.msra.mxu0 %v62_v49 }
  0x32   :  { %440 = vmatpush.msra.mxu3 %v62_v49  ;;  %134 = vmatmul.f32.vlgmr.msra.gmra.mxu0 %v614_v39 }
  0x33   :  { %137 = vmatmul.f32.vlgmr.msra.gmra.mxu3 %v617_v48 }
  0x37   :  { %183 = vmatmul.f32.gmra.mxu2 %v617_v48 }
  0x39   :  { %160 = vmatmul.f32.gmra.mxu1 %v617_v48 }
  0xae   :  { %v158_v57 = vpop.f32.mrf.mxu1 }
  0xaf   :  { %v135_v61 = vpop.f32.mrf.mxu0  ;;  %v159_v62 = vadd.f32 %v158_v57, %v113_v59 }
  0xb0   :  { %v136_v63 = vadd.f32 %v135_v61, %v112_v56 }
  0xb1   :  { %v210_v19 = vmul.f32 %v159_v62, %v159_v62 }
  0xb2   :  { %v181_v54 = vpop.f32.mrf.mxu2  ;;  %v187_v0 = vadd.f32 %v159_v62, %v136_v63 }
  0xb3   :  { %v182_v55 = vadd.f32 %v181_v54, %v114_v53 }
  0xb4   :  { %v206_v3 = vmul.f32 %v187_v0, %v187_v0  ;;  %v191_v20 = vmul.f32 %v187_v0, %v614_v39 }
  0xb5   :  { %v341_v58 = vsel %vm340_vm0, %v182_v55, -inf  ;;  %v627_v60 = vsel %vm340_vm0, %v182_v55, 0.0 }
  0xb6   :  { %343 = vmax.xlane.f32.xlu0 %v341_v58  ;;  %v161_v4 = vpop.f32.mrf.mxu1  ;;  %v138_v5 = vpop.f32.mrf.mxu3  ;;  %211 = vadd.xlane.f32.xlu1 %v206_v3 }
  0xb7   :  { %v162_v7 = vadd.f32 %v161_v4, %v113_v59  ;;  %v139_v8 = vadd.f32 %v138_v5, %v112_v56 }
  0xb9   :  { %v189_v10 = vadd.f32 %v162_v7, %v136_v63  ;;  %v188_v11 = vadd.f32 %v162_v7, %v139_v8  ;;  %v190_v15 = vadd.f32 %v159_v62, %v139_v8  ;;  %v223_v18 = vmul.f32 %v162_v7, %v162_v7 }
  0xba   :  { %v184_v1 = vpop.f32.mrf.mxu2  ;;  %v195_v22 = vmul.f32 %v162_v7, %v159_v62 }
  0xbb   :  { %v185_v2 = vadd.f32 %v184_v1, %v114_v53  ;;  %v208_v12 = vmul.f32 %v189_v10, %v189_v10  ;;  %v207_v13 = vmul.f32 %v188_v11, %v188_v11  ;;  %v209_v16 = vmul.f32 %v190_v15, %v190_v15 }
  0xbc   :  { %v194_v21 = vmul.f32 %v190_v15, %v614_v39  ;;  %v192_v34 = vmul.f32 %v188_v11, %v617_v48  ;;  %v193_v41 = vmul.f32 %v189_v10, %v617_v48 }
  0xbd   :  { %v342_v6 = vsel %vm340_vm0, %v185_v2, -inf  ;;  %v631_v9 = vsel %vm340_vm0, %v185_v2, 0.0  ;;  %215 = vadd.xlane.f32.xlu2 %v208_v12 }
  0xbe   :  { %345 = vmax.xlane.f32.xlu0 %v342_v6  ;;  %213 = vadd.xlane.f32.xlu1 %v207_v13 }
  0xc5   :  { %217 = vadd.xlane.f32.xlu2 %v209_v16 }
  0xc6   :  { %224 = vadd.xlane.f32.xlu0 %v221_v14  ;;  %226 = vadd.xlane.f32.xlu1 %v222_v17 }
  0xcd   :  { %219 = vadd.xlane.f32.xlu2 %v210_v19 }
  0xce   :  { %228 = vadd.xlane.f32.xlu0 %v223_v18 }
  0xd6   :  { %196 = vadd.xlane.f32.xlu0 %v191_v20 }
  0xde   :  { %202 = vadd.xlane.f32.xlu0 %v194_v21 }
  0xe6   :  { %204 = vadd.xlane.f32.xlu0 %v195_v22 }
 0x129   :  { %v639_v23 = vpop.xlane.xlu0 %343  ;;  %v212_v32 = vpop.xlane.xlu1 %211 }
 0x12a   :  { %v347_v24 = vsub.f32 %v341_v58, %v639_v23 }
 0x12c   :  { %v349_v25 = vmul.f32 1.442695, %v347_v24 }
 0x12e   :  { %457 = vpow2.f32 %v349_v25 }
 0x130   :  { %v645_v30 = vpop.xlane.xlu2 %215 }
 0x131   :  { %v642_v26 = vpop.xlane.xlu0 %345  ;;  %v214_v11 = vpop.xlane.xlu1 %213 }
 0x132   :  { %v348_v27 = vsub.f32 %v342_v6, %v642_v26 }
 0x134   :  { %v458_v28 = vpop.eup %457  ;;  %v351_v29 = vmul.f32 1.442695, %v348_v27 }
 0x135   :  { %353 = vadd.xlane.f32.xlu1 %v458_v28 }
 0x136   :  { %459 = vpow2.f32 %v351_v29 }
 0x138   :  { %v218_v37 = vpop.xlane.xlu2 %217 }
 0x139   :  { %v225_v31 = vpop.xlane.xlu0 %224  ;;  %v227_v12 = vpop.xlane.xlu1 %226 }
 0x13a   :  { %v230_v33 = vmul.f32 %v225_v31, %v212_v32  ;;  %v233_v38 = vmul.f32 %v225_v31, %v218_v37  ;;  %v231_v13 = vmul.f32 %v227_v12, %v214_v11  ;;  %v232_v15 = vmul.f32 %v227_v12, %v645_v30 }
 0x13c   :  { %v460_v35 = vpop.eup %459  ;;  %v235_v36 = vmax.f32 %v230_v33, 1e-16  ;;  %v238_v39 = vmax.f32 %v233_v38, 1e-16  ;;  %v236_v14 = vmax.f32 %v231_v13, 1e-16 }
 0x13d   :  { %355 = vadd.xlane.f32.xlu2 %v460_v35  ;;  %198 = vadd.xlane.f32.xlu1 %v192_v34  ;;  %v237_v16 = vmax.f32 %v232_v15, 1e-16 }
 0x13e   :  { %461 = vrsqrt.f32 %v235_v36  ;;  %vm246_vm1 = vweird.f32 %v235_v36  ;;  %vm276_vm4 = vweird.f32 %v238_v39  ;;  %vm256_vm11 = vweird.f32 %v236_v14 }
 0x13f   :  { %463 = vrsqrt.f32 %v238_v39  ;;  %vm266_vm14 = vweird.f32 %v237_v16 }
 0x140   :  { %v220_v44 = vpop.xlane.xlu2 %219 }
 0x141   :  { %v229_v40 = vpop.xlane.xlu0 %228 }
 0x142   :  { %v234_v45 = vmul.f32 %v229_v40, %v220_v44 }
 0x144   :  { %v462_v42 = vpop.eup %461  ;;  %v239_v49 = vmax.f32 %v234_v45, 1e-16 }
 0x145   :  { %200 = vadd.xlane.f32.xlu2 %v193_v41  ;;  %365 = vadd.xlane.f32.xlu1 %v627_v60  ;;  %v241_v43 = vmul.f32 %v462_v42, %v235_v36  ;;  %v464_v47 = vpop.eup %463  ;;  %vm247_vm2 = vweird.f32 %v462_v42 }
 0x146   :  { %v271_v53 = vmul.f32 %v464_v47, %v238_v39  ;;  %465 = vrsqrt.f32 %v239_v49  ;;  %vm248_vm3 = vmor %vm246_vm1, %vm247_vm2  ;;  %vm277_vm5 = vweird.f32 %v464_v47  ;;  %vm286_vm7 = vweird.f32 %v239_v49 }
 0x147   :  { %v242_v46 = vmul.f32 %v462_v42, %v241_v43  ;;  %vm278_vm6 = vmor %vm276_vm4, %vm277_vm5  ;;  %467 = vrsqrt.f32 %v236_v14 }
 0x148   :  { %v272_v55 = vmul.f32 %v464_v47, %v271_v53  ;;  %469 = vrsqrt.f32 %v237_v16 }
 0x149   :  { %v243_v51 = vmul.f32 0.5, %v242_v46  ;;  %v197_v52 = vpop.xlane.xlu0 %196 }
 0x14a   :  { %v273_v56 = vmul.f32 0.5, %v272_v55 }
 0x14b   :  { %v244_v54 = vsub.f32 1.5, %v243_v51 }
 0x14c   :  { %v274_v59 = vsub.f32 1.5, %v273_v56  ;;  %v466_v60 = vpop.eup %465 }
 0x14d   :  { %367 = vadd.xlane.f32.xlu2 %v631_v9  ;;  %v245_v48 = vmul.f32 %v462_v42, %v244_v54  ;;  %v281_v62 = vmul.f32 %v466_v60, %v239_v49  ;;  %vm287_vm8 = vweird.f32 %v466_v60  ;;  %v468_v17 = vpop.eup %467 }
 0x14e   :  { %v275_v63 = vmul.f32 %v464_v47, %v274_v59  ;;  %vm288_vm9 = vmor %vm286_vm7, %vm287_vm8  ;;  %v251_v18 = vmul.f32 %v468_v17, %v236_v14  ;;  %v470_v20 = vpop.eup %469  ;;  %vm257_vm12 = vweird.f32 %v468_v17 }
 0x14f   :  { %v249_v57 = vsel %vm248_vm3, %v462_v42, %v245_v48  ;;  %v282_v0 = vmul.f32 %v466_v60, %v281_v62  ;;  %v261_v21 = vmul.f32 %v470_v20, %v237_v16  ;;  %vm258_vm13 = vmor %vm256_vm11, %vm257_vm12  ;;  %vm267_vm15 = vweird.f32 %v470_v20 }
 0x150   :  { %v290_v58 = vmul.f32 %v249_v57, %v197_v52  ;;  %v279_v1 = vsel %vm278_vm6, %v464_v47, %v275_v63  ;;  %v252_v19 = vmul.f32 %v468_v17, %v251_v18  ;;  %vm268_vm0 = vmor %vm266_vm14, %vm267_vm15 }
 0x151   :  { %v203_v61 = vpop.xlane.xlu0 %202  ;;  %v283_v3 = vmul.f32 0.5, %v282_v0  ;;  %v262_v24 = vmul.f32 %v470_v20, %v261_v21 }
 0x152   :  { %v651_v2 = vmul.f32 %v279_v1, %v203_v61  ;;  %v253_v22 = vmul.f32 0.5, %v252_v19  ;;  %v295_v34 = vsub.f32 1.0, %v290_v58 }
 0x153   :  { %v284_v4 = vsub.f32 1.5, %v283_v3  ;;  %v263_v29 = vmul.f32 0.5, %v262_v24 }
 0x154   :  { %v254_v27 = vsub.f32 1.5, %v253_v22  ;;  %v300_v38 = vsel %vm299_vm10, %v295_v34, 0.0  ;;  %v298_v44 = vsub.f32 1.0, %v651_v2 }
 0x155   :  { %v285_v5 = vmul.f32 %v466_v60, %v284_v4  ;;  %v264_v33 = vsub.f32 1.5, %v263_v29  ;;  %v390_v29 = vshrl.u32 %v338_v50, 7 }
 0x156   :  { %v255_v28 = vmul.f32 %v468_v17, %v254_v27  ;;  %v314_v55 = vsel %vm299_vm10, %v298_v44, 0.0 }
 0x157   :  { %v289_v7 = vsel %vm288_vm9, %v466_v60, %v285_v5  ;;  %v265_v37 = vmul.f32 %v470_v20, %v264_v33  ;;  %vm395_vm1 = vcmp.eq.s32.totalorder %v390_v29, 4  ;;  %vm394_vm2 = vcmp.eq.s32.totalorder %v390_v29, 3 }
 0x158   :  { %v259_v32 = vsel %vm258_vm13, %v468_v17, %v255_v28  ;;  %vm393_vm3 = vcmp.eq.s32.totalorder %v390_v29, 2  ;;  %vm392_vm4 = vcmp.eq.s32.totalorder %v390_v29, 1  ;;  %vm391_vm5 = vcmp.eq.s32.totalorder %v390_v29, 0 }
 0x159   :  { %v205_v6 = vpop.xlane.xlu0 %204  ;;  %v269_v43 = vsel %vm268_vm0, %v470_v20, %v265_v37 }
 0x15a   :  { %v294_v8 = vmul.f32 %v289_v7, %v205_v6 }
 0x15c   :  { %v326_v9 = vmax.f32 %v294_v8, 0.0 }
 0x15e   :  { %v327_v10 = vsel %vm299_vm10, %v326_v9, 0.0 }
 0x15f   :  { %328 = vadd.xlane.f32.xlu0 %v327_v10 }
 0x1a8   :  { %v354_v25 = vpop.xlane.xlu1 %353 }
 0x1a9   :  { %471 = vlog2.f32 %v354_v25 }
 0x1af   :  { %v472_v41 = vpop.eup %471 }
 0x1b0   :  { %v356_v31 = vpop.xlane.xlu2 %355  ;;  %v199_v30 = vpop.xlane.xlu1 %198  ;;  %v358_v49 = vmul.f32 0.6931472, %v472_v41 }
 0x1b1   :  { %v291_v35 = vmul.f32 %v259_v32, %v199_v30  ;;  %473 = vlog2.f32 %v356_v31 }
 0x1b2   :  { %v361_v56 = vadd.f32 %v358_v49, %v639_v23 }
 0x1b3   :  { %v296_v36 = vsub.f32 1.0, %v291_v35 }
 0x1b5   :  { %v301_v39 = vsel %vm299_vm10, %v296_v36, 0.0 }
 0x1b6   :  { %v302_v40 = vadd.f32 %v301_v39, %v300_v38 }
 0x1b7   :  { %v474_v46 = vpop.eup %473 }
 0x1b8   :  { %v201_v42 = vpop.xlane.xlu2 %200  ;;  %303 = vadd.xlane.f32.xlu1 %v302_v40  ;;  %v366_v47 = vpop.xlane.xlu1 %365  ;;  %v360_v52 = vmul.f32 0.6931472, %v474_v46 }
 0x1b9   :  { %v292_v45 = vmul.f32 %v269_v43, %v201_v42  ;;  %v369_v53 = vmul.f32 0.25, %v366_v47 }
 0x1ba   :  { %v362_v58 = vadd.f32 %v360_v52, %v642_v26 }
 0x1bb   :  { %v297_v51 = vsub.f32 1.0, %v292_v45  ;;  %v371_v59 = vsub.f32 %v361_v56, %v369_v53 }
 0x1bd   :  { %v313_v54 = vsel %vm299_vm10, %v297_v51, 0.0  ;;  %v373_v62 = vsel %vm299_vm10, %v371_v59, 0.0 }
 0x1be   :  { %v315_v48 = vadd.f32 %v314_v55, %v313_v54 }
 0x1c0   :  { %v368_v57 = vpop.xlane.xlu2 %367  ;;  %316 = vadd.xlane.f32.xlu2 %v315_v48 }
 0x1c1   :  { %v370_v60 = vmul.f32 0.25, %v368_v57 }
 0x1c3   :  { %v372_v61 = vsub.f32 %v362_v58, %v370_v60 }
 0x1c5   :  { %v374_v63 = vsel %vm299_vm10, %v372_v61, 0.0 }
 0x1c6   :  { %v375_v0 = vadd.f32 %v374_v63, %v373_v62 }
 0x1c8   :  { %376 = vadd.xlane.f32.xlu1 %v375_v0 }
 0x1d2   :  { %v329_v1 = vpop.xlane.xlu0 %328 }
 0x1d3   :  { %v330_v2 = vrot.slane %v329_v1, 4 }
 0x1d5   :  { %v331_v6 = vadd.f32 %v330_v2, %v329_v1 }
 0x1d7   :  { %v332_v8 = vrot.slane %v331_v6, 2 }
 0x1d9   :  { %v333_v13 = vadd.f32 %v332_v8, %v331_v6 }
 0x1db   :  { %v334_v17 = vrot.slane %v333_v13, 1 }
 0x1dd   :  { %v335_v22 = vadd.f32 %v334_v17, %v333_v13 }
 0x22b   :  { %v304_v3 = vpop.xlane.xlu1 %303 }
 0x22c   :  { %v305_v4 = vrot.slane %v304_v3, 4 }
 0x22e   :  { %v306_v5 = vadd.f32 %v305_v4, %v304_v3 }
 0x230   :  { %v307_v23 = vrot.slane %v306_v5, 2 }
 0x232   :  { %v308_v7 = vadd.f32 %v307_v23, %v306_v5 }
 0x233   :  { %v317_v9 = vpop.xlane.xlu2 %316 }
 0x234   :  { %v318_v26 = vrot.slane %v317_v9, 4  ;;  %v309_v10 = vrot.slane %v308_v7, 1 }
 0x236   :  { %v319_v11 = vadd.f32 %v318_v26, %v317_v9  ;;  %v310_v12 = vadd.f32 %v309_v10, %v308_v7 }
 0x238   :  { %v320_v14 = vrot.slane %v319_v11, 2  ;;  %441 = vpush %v310_v12 }
 0x23a   :  { %v321_v15 = vadd.f32 %v320_v14, %v319_v11 }
 0x23b   :  { %v377_v16 = vpop.xlane.xlu1 %376 }
 0x23c   :  { %v378_v18 = vrot.slane %v377_v16, 4  ;;  %v322_v19 = vrot.slane %v321_v15, 1 }
 0x23e   :  { %v379_v20 = vadd.f32 %v378_v18, %v377_v16  ;;  %v323_v21 = vadd.f32 %v322_v19, %v321_v15 }
 0x240   :  { %v380_v24 = vrot.slane %v379_v20, 2  ;;  %443 = vpush %v323_v21 }
 0x241   :  { %445 = vpush %v335_v22 }
 0x242   :  { %v381_v25 = vadd.f32 %v380_v24, %v379_v20 }
 0x244   :  { %v382_v27 = vrot.slane %v381_v25, 1 }
 0x246   :  { %v383_v28 = vadd.f32 %v382_v27, %v381_v25 }
 0x248   :  { %447 = vpush %v383_v28 }
 0x269   :  { %s442_s0 = spop %441 }
 0x26a   :  { %s312_s4 = smul.f32 0.125, %s442_s0 }
 0x26c   :  { %v402_v34 = vstv %s312_s4 }
 0x271   :  { %s444_s2 = spop %443 }
 0x272   :  { %s325_s30 = smul.f32 0.125, %s444_s2  ;;  %s446_s5 = spop %445 }
 0x273   :  { %s337_s7 = smul.f32 0.125, %s446_s5 }
 0x274   :  { %s386_s6 = sadd.f32 %s325_s30, %s312_s4  ;;  %v400_v50 = vstv %s325_s30 }
 0x275   :  { %v398_v32 = vstv %s337_s7 }
 0x276   :  { %s387_s9 = sadd.f32 %s386_s6, %s337_s7 }
 0x279   :  { %s448_s8 = spop %447 }
 0x27a   :  { %s385_s10 = smul.f32 0.125, %s448_s8 }
 0x27c   :  { %s388_s11 = sadd.f32 %s387_s9, %s385_s10  ;;  %v396_v31 = vstv %s385_s10 }
 0x27d   :  { %v397_v30 = vsel %vm395_vm1, %v396_v31, 0.0 }
 0x27e   :  { %v399_v33 = vsel %vm394_vm2, %v398_v32, %v397_v30  ;;  %v404_v36 = vstv %s388_s11 }
 0x27f   :  { %v401_v35 = vsel %vm393_vm3, %v400_v50, %v399_v33 }
 0x280   :  { %v403_v37 = vsel %vm392_vm4, %v402_v34, %v401_v35 }
 0x281   :  { %v405_v38 = vsel %vm391_vm5, %v404_v36, %v403_v37 }
 0x282   :  { %406 = vst [vmem:[#allocation8] sm:$0xff] %v405_v38 }
 0x283   :  { %417 = dma.vmem_to_hbm [thread:$0]  %s413_s13, 128, %s415_s16, [#allocation4]  }
 0x284   :  { %575 = dma.done.wait [#allocation4], 128  }
 0x285   :  { %576 = vsyncadd [#allocation4], 4294967168 }
 0x286   :  { %422 = vsyncpa [#allocation3], 1 }
 0x287   :  { %423 = vsyncpa [#allocation6], 1 }
 0x288   :  { %424 = vsyncpa [#allocation4], 1 }

</bundles_post_ra>
